<compile_context>
chip_gen: v7x
topology: tpu7x:2x2x1
jax: 0.10.0
libtpu: 0.0.40
codegen_flags: <defaults>
</compile_context>

<pallas_src>
import numpy as np

import jax
import jax.numpy as jnp
from jax import lax
from jax.experimental import pallas as pl
from jax.experimental.pallas import tpu as pltpu


_EPS = 1e-12
_TARGET_BLOCK_ELEMS = 64 * 1024      # ~256 KiB of f32 per block


# --------------------------------------------------------------------------
# Closed-form CPAB math (shared by the Pallas kernel and the pure-JAX ref).
# --------------------------------------------------------------------------
def _cpab_psi(xs, t, a, b):
    """Analytic flow of dz/dt = a*z + b for time t, starting at xs."""
    a_zero = jnp.abs(a) < _EPS
    sa = jnp.where(a_zero, 1.0, a)
    eta = jnp.exp(t * a)
    return jnp.where(a_zero, xs + t * b, eta * xs + (b / sa) * (eta - 1.0))


def _cpab_step(xs, t, c, a, b, nc):
    """One integration step: points whose flow stays in cell c are left alone;
    the rest are advanced to the boundary they exit through (time debited,
    cell index stepped)."""
    inv_nc = 1.0 / float(nc)
    cf = c.astype(jnp.float32)
    left = cf * inv_nc
    right = (cf + 1.0) * inv_nc

    v = a * xs + b
    psi = _cpab_psi(xs, t, a, b)
    valid = jnp.logical_or(
        jnp.logical_and(left <= psi, psi <= right),
        jnp.logical_or(jnp.logical_and(v >= 0.0, c == nc - 1),
                       jnp.logical_and(v <= 0.0, c == 0)))

    # Boundary the (still invalid) trajectory exits through and time to reach
    # it.  Guards keep masked lanes finite; their values are discarded.
    xc = jnp.where(v >= 0.0, right, left)
    a_zero = jnp.abs(a) < _EPS
    sa = jnp.where(a_zero, 1.0, a)
    sb = jnp.where(jnp.abs(b) < _EPS, 1.0, b)
    den = a * xs + b
    sden = jnp.where(jnp.abs(den) < _EPS, 1.0, den)
    ratio = (a * xc + b) / sden
    t_hit = jnp.where(a_zero, (xc - xs) / sb,
                      jnp.log(jnp.maximum(ratio, _EPS)) / sa)

    xs_n = jnp.where(valid, xs, xc)
    t_n = jnp.where(valid, t, t - t_hit)
    c_n = jnp.where(valid, c, c + jnp.where(v >= 0.0, 1, -1))
    return xs_n, t_n, c_n


# --------------------------------------------------------------------------
# Pallas kernel
# --------------------------------------------------------------------------
def _make_cpab_kernel(nc: int, radius: float):
    nc_f = float(nc)
    inv_2r = 1.0 / (2.0 * radius)
    two_r = 2.0 * radius

    def kernel(a_ref, b_ref, t_ref, x_ref, o_ref):
        # a_ref/b_ref: (nc,) per-cell velocity coeffs in SMEM
        # t_ref:       (1,)  integration time in SMEM
        # x_ref/o_ref: (block_rows, width) lane-dense tiles in VMEM
        x = x_ref[...].astype(jnp.float32)

        # Normalize into the CPAB domain [0, 1]; out-of-domain is passthrough.
        xn = (x + radius) * inv_2r
        outside = jnp.logical_or(xn >= 1.0, xn <= 0.0)

        xs0 = jnp.clip(xn, 0.0, 1.0)
        t0 = jnp.zeros_like(xs0) + t_ref[0]
        c0 = jnp.clip(jnp.floor(xs0 * nc_f), 0.0, nc_f - 1.0).astype(jnp.int32)

        def gather(c):
            # Per-point (a_c, b_c) via an unrolled SMEM-scalar select chain
            # (nc is small; avoids any dynamic VMEM gather).
            a = jnp.zeros(c.shape, jnp.float32)
            b = jnp.zeros(c.shape, jnp.float32)
            for k in range(nc):
                sel = c == k
                a = jnp.where(sel, a_ref[k], a)
                b = jnp.where(sel, b_ref[k], b)
            return a, b

        def body(_, carry):
            xs, t, c = carry
            a, b = gather(c)
            return _cpab_step(xs, t, c, a, b, nc)

        # At most nc-1 boundary crossings, then one final analytic flow.
        xs, t, c = lax.fori_loop(0, nc - 1, body, (xs0, t0, c0))
        a, b = gather(c)
        psi = _cpab_psi(xs, t, a, b)

        y = psi * two_r - radius
        o_ref[...] = jnp.where(outside, x, y).astype(o_ref.dtype)

    return kernel


def _round_up(v: int, m: int) -> int:
    return ((v + m - 1) // m) * m


def cpab_warp_pallas(x_flat, a_tab, b_tab, time, *, radius: float, nc: int):
    """Apply the CPAB activation to a flat vector via the Pallas kernel."""
    n = x_flat.shape[0]
    dtype = x_flat.dtype
    itemsize = jnp.dtype(dtype).itemsize
    sub = {4: 8, 2: 16, 1: 32}.get(itemsize, 8)      # sublane packing per dtype

    # Lane-dense slab: width is a multiple of 128 (bigger for bigger inputs).
    if n >= 64 * 1024:
        width = 1024
    elif n >= 8 * 512:
        width = 512
    else:
        width = 128

    rows = pl.cdiv(n, width)
    rows_r = _round_up(rows, sub)
    target_rows = max(sub, (_TARGET_BLOCK_ELEMS // width) // sub * sub)
    block_rows = min(rows_r, target_rows)
    rows_pad = _round_up(rows, block_rows)
    total = rows_pad * width

    xp = x_flat if total == n else jnp.pad(x_flat, (0, total - n))
    x2 = xp.reshape(rows_pad, width)

    a_arr = a_tab.astype(jnp.float32)
    b_arr = b_tab.astype(jnp.float32)
    # TODO(synk): per-element/tensor integration time is not supported; `time`
    # is treated as a scalar (difw's transform_grid default semantics).
    t_arr = jnp.asarray(time, dtype=jnp.float32).reshape(-1)[:1]

    grid = (rows_pad // block_rows,)
    kernel = _make_cpab_kernel(nc=nc, radius=float(radius))

    # Alias the output onto the input slab only when we own a fresh padded
    # copy (avoids any sharp edge with caller-visible buffers).
    aliases = {3: 0} if total != n else {}

    out2 = pl.pallas_call(
        kernel,
        out_shape=jax.ShapeDtypeStruct((rows_pad, width), dtype),
        grid=grid,
        in_specs=[
            pl.BlockSpec(memory_space=pltpu.MemorySpace.SMEM),   # a_tab
            pl.BlockSpec(memory_space=pltpu.MemorySpace.SMEM),   # b_tab
            pl.BlockSpec(memory_space=pltpu.MemorySpace.SMEM),   # time
            pl.BlockSpec((block_rows, width), lambda i: (i, 0)),  # x slab
        ],
        out_specs=pl.BlockSpec((block_rows, width), lambda i: (i, 0)),
        input_output_aliases=aliases,
        compiler_params=pltpu.CompilerParams(
            dimension_semantics=("parallel",)),
    )(a_arr, b_arr, t_arr, x2)

    return out2.reshape(-1)[:n]


# --------------------------------------------------------------------------
# Module-level plumbing (parameter/basis handling, tiny — plain JAX/numpy).
# --------------------------------------------------------------------------
def _cpab_basis(nc: int, zero_boundary: bool = True) -> np.ndarray:
    """Null-space basis B ([2*nc, d]) of the 1-D CPA constraint matrix on [0,1].

    vec(A) = [a_0, b_0, a_1, b_1, ...]; constraints: continuity of v at
    interior knots k/nc, plus v(0) = v(1) = 0 when zero_boundary.
    """
    # TODO(synk): difw's default 'rref' basis differs from this orthonormal
    # SVD null-space basis by an invertible linear reparameterization of theta.
    D = 2 * nc
    rows = []
    for k in range(1, nc):
        xk = k / nc
        r = np.zeros(D)
        r[2 * (k - 1)] = xk
        r[2 * (k - 1) + 1] = 1.0
        r[2 * k] = -xk
        r[2 * k + 1] = -1.0
        rows.append(r)
    if zero_boundary:
        r = np.zeros(D); r[1] = 1.0; rows.append(r)                       # v(0)=0
        r = np.zeros(D); r[2 * (nc - 1)] = 1.0; r[2 * (nc - 1) + 1] = 1.0  # v(1)=0
        rows.append(r)
    L = np.stack(rows)
    _, s, vh = np.linalg.svd(L)
    rank = int(np.sum(s > 1e-10 * s[0]))
    return np.ascontiguousarray(vh[rank:].T)          # (2*nc, d)


def _maybe_transform_theta(theta, transform_theta, use_tanh):
    if not transform_theta:
        return theta
    if use_tanh:
        return jnp.tanh(theta)
    tmin = theta.min(axis=0)
    tmax = theta.max(axis=0)
    return 2.0 * ((theta - tmin) / (tmax - tmin)) - 1.0


class CPABActivationSame:
    """JAX/Pallas mirror of the PyTorch CPABActivationSame module."""

    def __init__(self, radius, tess_size=16, zero_boundary=True, channel=1,
                 transform_theta=False, use_tanh=False, key=None):
        if channel != 1:
            # TODO(synk): channel > 1 is not supported; the reference forward's
            # squeeze / boolean-index path only makes sense for channel == 1.
            raise ValueError("channel must be 1")
        self.radius = float(radius)
        self.nc = int(tess_size)
        self.d = tess_size - 1 if zero_boundary else tess_size + 1
        self.zero_boundary = zero_boundary
        self.transform_theta = transform_theta
        self.use_tanh = use_tanh
        self.B = jnp.asarray(_cpab_basis(self.nc, zero_boundary), jnp.float32)
        key = jax.random.PRNGKey(0) if key is None else key
        self.theta = jax.random.normal(key, (channel, self.d), dtype=jnp.float32)

    def __call__(self, x, edge_index=None, edge_attr=None, batch=None, time=1.0):
        # edge_index / edge_attr / batch are unused, as in the PyTorch forward.
        theta = _maybe_transform_theta(self.theta, self.transform_theta,
                                       self.use_tanh)
        # theta -> per-cell affine velocity coefficients (tiny matmul, plain JAX).
        A = (theta @ self.B.T).reshape(theta.shape[0], self.nc, 2)
        a_tab, b_tab = A[0, :, 0], A[0, :, 1]
        y_flat = cpab_warp_pallas(x.reshape(-1), a_tab, b_tab, time,
                                  radius=self.radius, nc=self.nc)
        return y_flat.reshape(x.shape), theta


# --------------------------------------------------------------------------
# Pure-JAX reference (same closed-form algorithm, no Pallas)
# --------------------------------------------------------------------------
def cpab_warp_reference(x_flat, a_tab, b_tab, time, radius, nc):
    xf = x_flat.astype(jnp.float32)
    xn = (xf + radius) / (2.0 * radius)
    outside = jnp.logical_or(xn >= 1.0, xn <= 0.0)
    xs = jnp.clip(xn, 0.0, 1.0)
    t = jnp.full_like(xs, jnp.float32(time))
    c = jnp.clip(jnp.floor(xs * nc), 0.0, nc - 1.0).astype(jnp.int32)
    for _ in range(nc - 1):
        a, b = a_tab[c], b_tab[c]
        xs, t, c = _cpab_step(xs, t, c, a, b, nc)
    a, b = a_tab[c], b_tab[c]
    psi = _cpab_psi(xs, t, a, b)
    y = psi * (2.0 * radius) - radius
    return jnp.where(outside, xf, y).astype(x_flat.dtype)


if __name__ == "__main__":
    key = jax.random.PRNGKey(0)
    k_theta, k_x, k_ea = jax.random.split(key, 3)

    num_nodes, hidden = 8, 32
    num_edges = 16
    tess_size = 16
    radius = 1.0       # with x ~ N(0,1) both in-domain and passthrough paths fire

    act = CPABActivationSame(radius=radius, tess_size=tess_size,
                             zero_boundary=True, channel=1, key=k_theta)

    x = jax.random.normal(k_x, (num_nodes, hidden), dtype=jnp.float32)
    edge_index = jnp.zeros((2, num_edges), dtype=jnp.int32)            # unused
    edge_attr = jax.random.normal(k_ea, (num_edges, 4), jnp.float32)   # unused
    batch = jnp.zeros((num_nodes,), dtype=jnp.int32)                   # unused
    time = 1.0                                                         # CPAB integration time

    out, theta = act(x, edge_index, edge_attr, batch, time)
    out = jax.block_until_ready(out)

    # Pure-JAX reference of the same closed-form CPAB integration.
    A = (theta @ act.B.T).reshape(1, tess_size, 2)[0]
    ref = cpab_warp_reference(x.reshape(-1), A[:, 0], A[:, 1], 1.0,
                              radius, tess_size).reshape(x.shape)

    assert out.shape == x.shape and out.dtype == x.dtype
    assert theta.shape == (1, tess_size - 1)

    # Out-of-domain inputs must pass through unchanged.
    xn = (x + radius) / (2.0 * radius)
    outside = jnp.logical_or(xn >= 1.0, xn <= 0.0)
    assert bool(jnp.allclose(jnp.where(outside, out, 0.0),
                             jnp.where(outside, x, 0.0)))

    err = float(jnp.max(jnp.abs(out - ref)))
    assert bool(jnp.allclose(out, ref, atol=2e-4, rtol=2e-4)), f"max err {err}"

    print("KERNEL_OK")
</pallas_src>

<mosaic_0001>
module attributes {stable_mosaic.version = 11 : i64} {
  func.func @kernel(%arg0: i32, %arg1: memref<16xf32, #tpu.memory_space<smem>>, %arg2: memref<16xf32, #tpu.memory_space<smem>>, %arg3: memref<1xf32, #tpu.memory_space<smem>>, %arg4: memref<8x128xf32, #tpu.memory_space<vmem>>, %arg5: memref<8x128xf32, #tpu.memory_space<vmem>>) attributes {dimension_semantics = [#tpu.dimension_semantics<parallel>], iteration_bounds = array<i64: 1>, scalar_prefetch = 0 : i64, scratch_operands = 0 : i64, tpu.core_type = #tpu.core_type<tc>, window_params = [{transform_indices = @transform_0, window_bounds = array<i64: 16>}, {transform_indices = @transform_1, window_bounds = array<i64: 16>}, {transform_indices = @transform_2, window_bounds = array<i64: 1>}, {transform_indices = @transform_3, window_bounds = array<i64: 8, 128>}, {transform_indices = @transform_4, window_bounds = array<i64: 8, 128>}]} {
    %c0 = arith.constant 0 : index
    %c0_0 = arith.constant 0 : index
    %0 = vector.load %arg4[%c0, %c0_0] : memref<8x128xf32, #tpu.memory_space<vmem>>, vector<8x128xf32>
    %cst = arith.constant 1.000000e+00 : f32
    %1 = vector.broadcast %cst : f32 to vector<8x128xf32>
    %2 = arith.addf %0, %1 : vector<8x128xf32>
    %cst_1 = arith.constant 5.000000e-01 : f32
    %3 = vector.broadcast %cst_1 : f32 to vector<8x128xf32>
    %4 = arith.mulf %2, %3 : vector<8x128xf32>
    %cst_2 = arith.constant 1.000000e+00 : f32
    %5 = vector.broadcast %cst_2 : f32 to vector<8x128xf32>
    %6 = arith.cmpf oge, %4, %5 : vector<8x128xf32>
    %cst_3 = arith.constant 0.000000e+00 : f32
    %7 = vector.broadcast %cst_3 : f32 to vector<8x128xf32>
    %8 = arith.cmpf ole, %4, %7 : vector<8x128xf32>
    %9 = arith.ori %6, %8 : vector<8x128xi1>
    %cst_4 = arith.constant 0.000000e+00 : f32
    %cst_5 = arith.constant 1.000000e+00 : f32
    %10 = vector.broadcast %cst_4 : f32 to vector<8x128xf32>
    %11 = arith.maximumf %10, %4 : vector<8x128xf32>
    %12 = vector.broadcast %cst_5 : f32 to vector<8x128xf32>
    %13 = arith.minimumf %12, %11 : vector<8x128xf32>
    %cst_6 = arith.constant 0.000000e+00 : f32
    %14 = vector.broadcast %cst_6 : f32 to vector<8x128xf32>
    %c0_7 = arith.constant 0 : index
    %15 = memref.load %arg3[%c0_7] : memref<1xf32, #tpu.memory_space<smem>>
    %16 = vector.broadcast %15 : f32 to vector<8x128xf32>
    %17 = arith.addf %14, %16 : vector<8x128xf32>
    %cst_8 = arith.constant 1.600000e+01 : f32
    %18 = vector.broadcast %cst_8 : f32 to vector<8x128xf32>
    %19 = arith.mulf %13, %18 : vector<8x128xf32>
    %20 = math.floor %19 : vector<8x128xf32>
    %cst_9 = arith.constant 0.000000e+00 : f32
    %cst_10 = arith.constant 1.500000e+01 : f32
    %21 = vector.broadcast %cst_9 : f32 to vector<8x128xf32>
    %22 = arith.maximumf %21, %20 : vector<8x128xf32>
    %23 = vector.broadcast %cst_10 : f32 to vector<8x128xf32>
    %24 = arith.minimumf %23, %22 : vector<8x128xf32>
    %25 = arith.fptosi %24 : vector<8x128xf32> to vector<8x128xi32>
    %c0_i32 = arith.constant 0 : i32
    %c15_i32 = arith.constant 15 : i32
    %26 = arith.addi %c0_i32, %c15_i32 : i32
    %c1_i32 = arith.constant 1 : i32
    %27:3 = scf.for %arg6 = %c0_i32 to %26 step %c1_i32 iter_args(%arg7 = %13, %arg8 = %17, %arg9 = %25) -> (vector<8x128xf32>, vector<8x128xf32>, vector<8x128xi32>)  : i32 {
      %cst_40 = arith.constant 0.000000e+00 : f32
      %180 = vector.broadcast %cst_40 : f32 to vector<8x128xf32>
      %cst_41 = arith.constant 0.000000e+00 : f32
      %181 = vector.broadcast %cst_41 : f32 to vector<8x128xf32>
      %c0_i32_42 = arith.constant 0 : i32
      %182 = vector.broadcast %c0_i32_42 : i32 to vector<8x128xi32>
      %183 = arith.cmpi eq, %arg9, %182 : vector<8x128xi32>
      %c0_43 = arith.constant 0 : index
      %184 = memref.load %arg1[%c0_43] : memref<16xf32, #tpu.memory_space<smem>>
      %185 = vector.broadcast %184 : f32 to vector<8x128xf32>
      %186 = arith.select %183, %185, %180 : vector<8x128xi1>, vector<8x128xf32>
      %c0_44 = arith.constant 0 : index
      %187 = memref.load %arg2[%c0_44] : memref<16xf32, #tpu.memory_space<smem>>
      %188 = vector.broadcast %187 : f32 to vector<8x128xf32>
      %189 = arith.select %183, %188, %181 : vector<8x128xi1>, vector<8x128xf32>
      %c1_i32_45 = arith.constant 1 : i32
      %190 = vector.broadcast %c1_i32_45 : i32 to vector<8x128xi32>
      %191 = arith.cmpi eq, %arg9, %190 : vector<8x128xi32>
      %c1_46 = arith.constant 1 : index
      %192 = memref.load %arg1[%c1_46] : memref<16xf32, #tpu.memory_space<smem>>
      %193 = vector.broadcast %192 : f32 to vector<8x128xf32>
      %194 = arith.select %191, %193, %186 : vector<8x128xi1>, vector<8x128xf32>
      %c1_47 = arith.constant 1 : index
      %195 = memref.load %arg2[%c1_47] : memref<16xf32, #tpu.memory_space<smem>>
      %196 = vector.broadcast %195 : f32 to vector<8x128xf32>
      %197 = arith.select %191, %196, %189 : vector<8x128xi1>, vector<8x128xf32>
      %c2_i32_48 = arith.constant 2 : i32
      %198 = vector.broadcast %c2_i32_48 : i32 to vector<8x128xi32>
      %199 = arith.cmpi eq, %arg9, %198 : vector<8x128xi32>
      %c2_49 = arith.constant 2 : index
      %200 = memref.load %arg1[%c2_49] : memref<16xf32, #tpu.memory_space<smem>>
      %201 = vector.broadcast %200 : f32 to vector<8x128xf32>
      %202 = arith.select %199, %201, %194 : vector<8x128xi1>, vector<8x128xf32>
      %c2_50 = arith.constant 2 : index
      %203 = memref.load %arg2[%c2_50] : memref<16xf32, #tpu.memory_space<smem>>
      %204 = vector.broadcast %203 : f32 to vector<8x128xf32>
      %205 = arith.select %199, %204, %197 : vector<8x128xi1>, vector<8x128xf32>
      %c3_i32_51 = arith.constant 3 : i32
      %206 = vector.broadcast %c3_i32_51 : i32 to vector<8x128xi32>
      %207 = arith.cmpi eq, %arg9, %206 : vector<8x128xi32>
      %c3_52 = arith.constant 3 : index
      %208 = memref.load %arg1[%c3_52] : memref<16xf32, #tpu.memory_space<smem>>
      %209 = vector.broadcast %208 : f32 to vector<8x128xf32>
      %210 = arith.select %207, %209, %202 : vector<8x128xi1>, vector<8x128xf32>
      %c3_53 = arith.constant 3 : index
      %211 = memref.load %arg2[%c3_53] : memref<16xf32, #tpu.memory_space<smem>>
      %212 = vector.broadcast %211 : f32 to vector<8x128xf32>
      %213 = arith.select %207, %212, %205 : vector<8x128xi1>, vector<8x128xf32>
      %c4_i32_54 = arith.constant 4 : i32
      %214 = vector.broadcast %c4_i32_54 : i32 to vector<8x128xi32>
      %215 = arith.cmpi eq, %arg9, %214 : vector<8x128xi32>
      %c4_55 = arith.constant 4 : index
      %216 = memref.load %arg1[%c4_55] : memref<16xf32, #tpu.memory_space<smem>>
      %217 = vector.broadcast %216 : f32 to vector<8x128xf32>
      %218 = arith.select %215, %217, %210 : vector<8x128xi1>, vector<8x128xf32>
      %c4_56 = arith.constant 4 : index
      %219 = memref.load %arg2[%c4_56] : memref<16xf32, #tpu.memory_space<smem>>
      %220 = vector.broadcast %219 : f32 to vector<8x128xf32>
      %221 = arith.select %215, %220, %213 : vector<8x128xi1>, vector<8x128xf32>
      %c5_i32_57 = arith.constant 5 : i32
      %222 = vector.broadcast %c5_i32_57 : i32 to vector<8x128xi32>
      %223 = arith.cmpi eq, %arg9, %222 : vector<8x128xi32>
      %c5_58 = arith.constant 5 : index
      %224 = memref.load %arg1[%c5_58] : memref<16xf32, #tpu.memory_space<smem>>
      %225 = vector.broadcast %224 : f32 to vector<8x128xf32>
      %226 = arith.select %223, %225, %218 : vector<8x128xi1>, vector<8x128xf32>
      %c5_59 = arith.constant 5 : index
      %227 = memref.load %arg2[%c5_59] : memref<16xf32, #tpu.memory_space<smem>>
      %228 = vector.broadcast %227 : f32 to vector<8x128xf32>
      %229 = arith.select %223, %228, %221 : vector<8x128xi1>, vector<8x128xf32>
      %c6_i32_60 = arith.constant 6 : i32
      %230 = vector.broadcast %c6_i32_60 : i32 to vector<8x128xi32>
      %231 = arith.cmpi eq, %arg9, %230 : vector<8x128xi32>
      %c6_61 = arith.constant 6 : index
      %232 = memref.load %arg1[%c6_61] : memref<16xf32, #tpu.memory_space<smem>>
      %233 = vector.broadcast %232 : f32 to vector<8x128xf32>
      %234 = arith.select %231, %233, %226 : vector<8x128xi1>, vector<8x128xf32>
      %c6_62 = arith.constant 6 : index
      %235 = memref.load %arg2[%c6_62] : memref<16xf32, #tpu.memory_space<smem>>
      %236 = vector.broadcast %235 : f32 to vector<8x128xf32>
      %237 = arith.select %231, %236, %229 : vector<8x128xi1>, vector<8x128xf32>
      %c7_i32_63 = arith.constant 7 : i32
      %238 = vector.broadcast %c7_i32_63 : i32 to vector<8x128xi32>
      %239 = arith.cmpi eq, %arg9, %238 : vector<8x128xi32>
      %c7_64 = arith.constant 7 : index
      %240 = memref.load %arg1[%c7_64] : memref<16xf32, #tpu.memory_space<smem>>
      %241 = vector.broadcast %240 : f32 to vector<8x128xf32>
      %242 = arith.select %239, %241, %234 : vector<8x128xi1>, vector<8x128xf32>
      %c7_65 = arith.constant 7 : index
      %243 = memref.load %arg2[%c7_65] : memref<16xf32, #tpu.memory_space<smem>>
      %244 = vector.broadcast %243 : f32 to vector<8x128xf32>
      %245 = arith.select %239, %244, %237 : vector<8x128xi1>, vector<8x128xf32>
      %c8_i32_66 = arith.constant 8 : i32
      %246 = vector.broadcast %c8_i32_66 : i32 to vector<8x128xi32>
      %247 = arith.cmpi eq, %arg9, %246 : vector<8x128xi32>
      %c8_67 = arith.constant 8 : index
      %248 = memref.load %arg1[%c8_67] : memref<16xf32, #tpu.memory_space<smem>>
      %249 = vector.broadcast %248 : f32 to vector<8x128xf32>
      %250 = arith.select %247, %249, %242 : vector<8x128xi1>, vector<8x128xf32>
      %c8_68 = arith.constant 8 : index
      %251 = memref.load %arg2[%c8_68] : memref<16xf32, #tpu.memory_space<smem>>
      %252 = vector.broadcast %251 : f32 to vector<8x128xf32>
      %253 = arith.select %247, %252, %245 : vector<8x128xi1>, vector<8x128xf32>
      %c9_i32_69 = arith.constant 9 : i32
      %254 = vector.broadcast %c9_i32_69 : i32 to vector<8x128xi32>
      %255 = arith.cmpi eq, %arg9, %254 : vector<8x128xi32>
      %c9_70 = arith.constant 9 : index
      %256 = memref.load %arg1[%c9_70] : memref<16xf32, #tpu.memory_space<smem>>
      %257 = vector.broadcast %256 : f32 to vector<8x128xf32>
      %258 = arith.select %255, %257, %250 : vector<8x128xi1>, vector<8x128xf32>
      %c9_71 = arith.constant 9 : index
      %259 = memref.load %arg2[%c9_71] : memref<16xf32, #tpu.memory_space<smem>>
      %260 = vector.broadcast %259 : f32 to vector<8x128xf32>
      %261 = arith.select %255, %260, %253 : vector<8x128xi1>, vector<8x128xf32>
      %c10_i32_72 = arith.constant 10 : i32
      %262 = vector.broadcast %c10_i32_72 : i32 to vector<8x128xi32>
      %263 = arith.cmpi eq, %arg9, %262 : vector<8x128xi32>
      %c10_73 = arith.constant 10 : index
      %264 = memref.load %arg1[%c10_73] : memref<16xf32, #tpu.memory_space<smem>>
      %265 = vector.broadcast %264 : f32 to vector<8x128xf32>
      %266 = arith.select %263, %265, %258 : vector<8x128xi1>, vector<8x128xf32>
      %c10_74 = arith.constant 10 : index
      %267 = memref.load %arg2[%c10_74] : memref<16xf32, #tpu.memory_space<smem>>
      %268 = vector.broadcast %267 : f32 to vector<8x128xf32>
      %269 = arith.select %263, %268, %261 : vector<8x128xi1>, vector<8x128xf32>
      %c11_i32_75 = arith.constant 11 : i32
      %270 = vector.broadcast %c11_i32_75 : i32 to vector<8x128xi32>
      %271 = arith.cmpi eq, %arg9, %270 : vector<8x128xi32>
      %c11_76 = arith.constant 11 : index
      %272 = memref.load %arg1[%c11_76] : memref<16xf32, #tpu.memory_space<smem>>
      %273 = vector.broadcast %272 : f32 to vector<8x128xf32>
      %274 = arith.select %271, %273, %266 : vector<8x128xi1>, vector<8x128xf32>
      %c11_77 = arith.constant 11 : index
      %275 = memref.load %arg2[%c11_77] : memref<16xf32, #tpu.memory_space<smem>>
      %276 = vector.broadcast %275 : f32 to vector<8x128xf32>
      %277 = arith.select %271, %276, %269 : vector<8x128xi1>, vector<8x128xf32>
      %c12_i32_78 = arith.constant 12 : i32
      %278 = vector.broadcast %c12_i32_78 : i32 to vector<8x128xi32>
      %279 = arith.cmpi eq, %arg9, %278 : vector<8x128xi32>
      %c12_79 = arith.constant 12 : index
      %280 = memref.load %arg1[%c12_79] : memref<16xf32, #tpu.memory_space<smem>>
      %281 = vector.broadcast %280 : f32 to vector<8x128xf32>
      %282 = arith.select %279, %281, %274 : vector<8x128xi1>, vector<8x128xf32>
      %c12_80 = arith.constant 12 : index
      %283 = memref.load %arg2[%c12_80] : memref<16xf32, #tpu.memory_space<smem>>
      %284 = vector.broadcast %283 : f32 to vector<8x128xf32>
      %285 = arith.select %279, %284, %277 : vector<8x128xi1>, vector<8x128xf32>
      %c13_i32_81 = arith.constant 13 : i32
      %286 = vector.broadcast %c13_i32_81 : i32 to vector<8x128xi32>
      %287 = arith.cmpi eq, %arg9, %286 : vector<8x128xi32>
      %c13_82 = arith.constant 13 : index
      %288 = memref.load %arg1[%c13_82] : memref<16xf32, #tpu.memory_space<smem>>
      %289 = vector.broadcast %288 : f32 to vector<8x128xf32>
      %290 = arith.select %287, %289, %282 : vector<8x128xi1>, vector<8x128xf32>
      %c13_83 = arith.constant 13 : index
      %291 = memref.load %arg2[%c13_83] : memref<16xf32, #tpu.memory_space<smem>>
      %292 = vector.broadcast %291 : f32 to vector<8x128xf32>
      %293 = arith.select %287, %292, %285 : vector<8x128xi1>, vector<8x128xf32>
      %c14_i32_84 = arith.constant 14 : i32
      %294 = vector.broadcast %c14_i32_84 : i32 to vector<8x128xi32>
      %295 = arith.cmpi eq, %arg9, %294 : vector<8x128xi32>
      %c14_85 = arith.constant 14 : index
      %296 = memref.load %arg1[%c14_85] : memref<16xf32, #tpu.memory_space<smem>>
      %297 = vector.broadcast %296 : f32 to vector<8x128xf32>
      %298 = arith.select %295, %297, %290 : vector<8x128xi1>, vector<8x128xf32>
      %c14_86 = arith.constant 14 : index
      %299 = memref.load %arg2[%c14_86] : memref<16xf32, #tpu.memory_space<smem>>
      %300 = vector.broadcast %299 : f32 to vector<8x128xf32>
      %301 = arith.select %295, %300, %293 : vector<8x128xi1>, vector<8x128xf32>
      %c15_i32_87 = arith.constant 15 : i32
      %302 = vector.broadcast %c15_i32_87 : i32 to vector<8x128xi32>
      %303 = arith.cmpi eq, %arg9, %302 : vector<8x128xi32>
      %c15_88 = arith.constant 15 : index
      %304 = memref.load %arg1[%c15_88] : memref<16xf32, #tpu.memory_space<smem>>
      %305 = vector.broadcast %304 : f32 to vector<8x128xf32>
      %306 = arith.select %303, %305, %298 : vector<8x128xi1>, vector<8x128xf32>
      %c15_89 = arith.constant 15 : index
      %307 = memref.load %arg2[%c15_89] : memref<16xf32, #tpu.memory_space<smem>>
      %308 = vector.broadcast %307 : f32 to vector<8x128xf32>
      %309 = arith.select %303, %308, %301 : vector<8x128xi1>, vector<8x128xf32>
      %310 = arith.sitofp %arg9 : vector<8x128xi32> to vector<8x128xf32>
      %cst_90 = arith.constant 6.250000e-02 : f32
      %311 = vector.broadcast %cst_90 : f32 to vector<8x128xf32>
      %312 = arith.mulf %310, %311 : vector<8x128xf32>
      %cst_91 = arith.constant 1.000000e+00 : f32
      %313 = vector.broadcast %cst_91 : f32 to vector<8x128xf32>
      %314 = arith.addf %310, %313 : vector<8x128xf32>
      %cst_92 = arith.constant 6.250000e-02 : f32
      %315 = vector.broadcast %cst_92 : f32 to vector<8x128xf32>
      %316 = arith.mulf %314, %315 : vector<8x128xf32>
      %317 = arith.mulf %306, %arg7 : vector<8x128xf32>
      %318 = arith.addf %317, %309 : vector<8x128xf32>
      %319 = math.absf %306 : vector<8x128xf32>
      %cst_93 = arith.constant 9.99999996E-13 : f32
      %320 = vector.broadcast %cst_93 : f32 to vector<8x128xf32>
      %321 = arith.cmpf olt, %319, %320 : vector<8x128xf32>
      %cst_94 = arith.constant 1.000000e+00 : f32
      %322 = vector.broadcast %cst_94 : f32 to vector<8x128xf32>
      %323 = arith.select %321, %322, %306 : vector<8x128xi1>, vector<8x128xf32>
      %324 = arith.mulf %arg8, %306 : vector<8x128xf32>
      %325 = math.exp %324 : vector<8x128xf32>
      %326 = arith.mulf %arg8, %309 : vector<8x128xf32>
      %327 = arith.addf %arg7, %326 : vector<8x128xf32>
      %328 = arith.mulf %325, %arg7 : vector<8x128xf32>
      %329 = arith.divf %309, %323 : vector<8x128xf32>
      %cst_95 = arith.constant 1.000000e+00 : f32
      %330 = vector.broadcast %cst_95 : f32 to vector<8x128xf32>
      %331 = arith.subf %325, %330 : vector<8x128xf32>
      %332 = arith.mulf %329, %331 : vector<8x128xf32>
      %333 = arith.addf %328, %332 : vector<8x128xf32>
      %334 = arith.select %321, %327, %333 : vector<8x128xi1>, vector<8x128xf32>
      %335 = arith.cmpf ole, %312, %334 : vector<8x128xf32>
      %336 = arith.cmpf ole, %334, %316 : vector<8x128xf32>
      %337 = arith.andi %335, %336 : vector<8x128xi1>
      %cst_96 = arith.constant 0.000000e+00 : f32
      %338 = vector.broadcast %cst_96 : f32 to vector<8x128xf32>
      %339 = arith.cmpf oge, %318, %338 : vector<8x128xf32>
      %c15_i32_97 = arith.constant 15 : i32
      %340 = vector.broadcast %c15_i32_97 : i32 to vector<8x128xi32>
      %341 = arith.cmpi eq, %arg9, %340 : vector<8x128xi32>
      %342 = arith.andi %339, %341 : vector<8x128xi1>
      %cst_98 = arith.constant 0.000000e+00 : f32
      %343 = vector.broadcast %cst_98 : f32 to vector<8x128xf32>
      %344 = arith.cmpf ole, %318, %343 : vector<8x128xf32>
      %c0_i32_99 = arith.constant 0 : i32
      %345 = vector.broadcast %c0_i32_99 : i32 to vector<8x128xi32>
      %346 = arith.cmpi eq, %arg9, %345 : vector<8x128xi32>
      %347 = arith.andi %344, %346 : vector<8x128xi1>
      %348 = arith.ori %342, %347 : vector<8x128xi1>
      %349 = arith.ori %337, %348 : vector<8x128xi1>
      %cst_100 = arith.constant 0.000000e+00 : f32
      %350 = vector.broadcast %cst_100 : f32 to vector<8x128xf32>
      %351 = arith.cmpf oge, %318, %350 : vector<8x128xf32>
      %352 = arith.select %351, %316, %312 : vector<8x128xi1>, vector<8x128xf32>
      %353 = math.absf %306 : vector<8x128xf32>
      %cst_101 = arith.constant 9.99999996E-13 : f32
      %354 = vector.broadcast %cst_101 : f32 to vector<8x128xf32>
      %355 = arith.cmpf olt, %353, %354 : vector<8x128xf32>
      %cst_102 = arith.constant 1.000000e+00 : f32
      %356 = vector.broadcast %cst_102 : f32 to vector<8x128xf32>
      %357 = arith.select %355, %356, %306 : vector<8x128xi1>, vector<8x128xf32>
      %358 = math.absf %309 : vector<8x128xf32>
      %cst_103 = arith.constant 9.99999996E-13 : f32
      %359 = vector.broadcast %cst_103 : f32 to vector<8x128xf32>
      %360 = arith.cmpf olt, %358, %359 : vector<8x128xf32>
      %cst_104 = arith.constant 1.000000e+00 : f32
      %361 = vector.broadcast %cst_104 : f32 to vector<8x128xf32>
      %362 = arith.select %360, %361, %309 : vector<8x128xi1>, vector<8x128xf32>
      %363 = arith.mulf %306, %arg7 : vector<8x128xf32>
      %364 = arith.addf %363, %309 : vector<8x128xf32>
      %365 = math.absf %364 : vector<8x128xf32>
      %cst_105 = arith.constant 9.99999996E-13 : f32
      %366 = vector.broadcast %cst_105 : f32 to vector<8x128xf32>
      %367 = arith.cmpf olt, %365, %366 : vector<8x128xf32>
      %cst_106 = arith.constant 1.000000e+00 : f32
      %368 = vector.broadcast %cst_106 : f32 to vector<8x128xf32>
      %369 = arith.select %367, %368, %364 : vector<8x128xi1>, vector<8x128xf32>
      %370 = arith.mulf %306, %352 : vector<8x128xf32>
      %371 = arith.addf %370, %309 : vector<8x128xf32>
      %372 = arith.divf %371, %369 : vector<8x128xf32>
      %373 = arith.subf %352, %arg7 : vector<8x128xf32>
      %374 = arith.divf %373, %362 : vector<8x128xf32>
      %cst_107 = arith.constant 9.99999996E-13 : f32
      %375 = vector.broadcast %cst_107 : f32 to vector<8x128xf32>
      %376 = arith.maximumf %372, %375 : vector<8x128xf32>
      %377 = math.log %376 : vector<8x128xf32>
      %378 = arith.divf %377, %357 : vector<8x128xf32>
      %379 = arith.select %355, %374, %378 : vector<8x128xi1>, vector<8x128xf32>
      %380 = arith.select %349, %arg7, %352 : vector<8x128xi1>, vector<8x128xf32>
      %381 = arith.subf %arg8, %379 : vector<8x128xf32>
      %382 = arith.select %349, %arg8, %381 : vector<8x128xi1>, vector<8x128xf32>
      %cst_108 = arith.constant 0.000000e+00 : f32
      %383 = vector.broadcast %cst_108 : f32 to vector<8x128xf32>
      %384 = arith.cmpf oge, %318, %383 : vector<8x128xf32>
      %c1_i32_109 = arith.constant 1 : i32
      %c-1_i32 = arith.constant -1 : i32
      %385 = vector.broadcast %c1_i32_109 : i32 to vector<8x128xi32>
      %386 = vector.broadcast %c-1_i32 : i32 to vector<8x128xi32>
      %387 = arith.select %384, %385, %386 : vector<8x128xi1>, vector<8x128xi32>
      %388 = arith.addi %arg9, %387 : vector<8x128xi32>
      %389 = arith.select %349, %arg9, %388 : vector<8x128xi1>, vector<8x128xi32>
      scf.yield %380, %382, %389 : vector<8x128xf32>, vector<8x128xf32>, vector<8x128xi32>
    }
    %cst_11 = arith.constant 0.000000e+00 : f32
    %28 = vector.broadcast %cst_11 : f32 to vector<8x128xf32>
    %cst_12 = arith.constant 0.000000e+00 : f32
    %29 = vector.broadcast %cst_12 : f32 to vector<8x128xf32>
    %c0_i32_13 = arith.constant 0 : i32
    %30 = vector.broadcast %c0_i32_13 : i32 to vector<8x128xi32>
    %31 = arith.cmpi eq, %27#2, %30 : vector<8x128xi32>
    %c0_14 = arith.constant 0 : index
    %32 = memref.load %arg1[%c0_14] : memref<16xf32, #tpu.memory_space<smem>>
    %33 = vector.broadcast %32 : f32 to vector<8x128xf32>
    %34 = arith.select %31, %33, %28 : vector<8x128xi1>, vector<8x128xf32>
    %c0_15 = arith.constant 0 : index
    %35 = memref.load %arg2[%c0_15] : memref<16xf32, #tpu.memory_space<smem>>
    %36 = vector.broadcast %35 : f32 to vector<8x128xf32>
    %37 = arith.select %31, %36, %29 : vector<8x128xi1>, vector<8x128xf32>
    %c1_i32_16 = arith.constant 1 : i32
    %38 = vector.broadcast %c1_i32_16 : i32 to vector<8x128xi32>
    %39 = arith.cmpi eq, %27#2, %38 : vector<8x128xi32>
    %c1 = arith.constant 1 : index
    %40 = memref.load %arg1[%c1] : memref<16xf32, #tpu.memory_space<smem>>
    %41 = vector.broadcast %40 : f32 to vector<8x128xf32>
    %42 = arith.select %39, %41, %34 : vector<8x128xi1>, vector<8x128xf32>
    %c1_17 = arith.constant 1 : index
    %43 = memref.load %arg2[%c1_17] : memref<16xf32, #tpu.memory_space<smem>>
    %44 = vector.broadcast %43 : f32 to vector<8x128xf32>
    %45 = arith.select %39, %44, %37 : vector<8x128xi1>, vector<8x128xf32>
    %c2_i32 = arith.constant 2 : i32
    %46 = vector.broadcast %c2_i32 : i32 to vector<8x128xi32>
    %47 = arith.cmpi eq, %27#2, %46 : vector<8x128xi32>
    %c2 = arith.constant 2 : index
    %48 = memref.load %arg1[%c2] : memref<16xf32, #tpu.memory_space<smem>>
    %49 = vector.broadcast %48 : f32 to vector<8x128xf32>
    %50 = arith.select %47, %49, %42 : vector<8x128xi1>, vector<8x128xf32>
    %c2_18 = arith.constant 2 : index
    %51 = memref.load %arg2[%c2_18] : memref<16xf32, #tpu.memory_space<smem>>
    %52 = vector.broadcast %51 : f32 to vector<8x128xf32>
    %53 = arith.select %47, %52, %45 : vector<8x128xi1>, vector<8x128xf32>
    %c3_i32 = arith.constant 3 : i32
    %54 = vector.broadcast %c3_i32 : i32 to vector<8x128xi32>
    %55 = arith.cmpi eq, %27#2, %54 : vector<8x128xi32>
    %c3 = arith.constant 3 : index
    %56 = memref.load %arg1[%c3] : memref<16xf32, #tpu.memory_space<smem>>
    %57 = vector.broadcast %56 : f32 to vector<8x128xf32>
    %58 = arith.select %55, %57, %50 : vector<8x128xi1>, vector<8x128xf32>
    %c3_19 = arith.constant 3 : index
    %59 = memref.load %arg2[%c3_19] : memref<16xf32, #tpu.memory_space<smem>>
    %60 = vector.broadcast %59 : f32 to vector<8x128xf32>
    %61 = arith.select %55, %60, %53 : vector<8x128xi1>, vector<8x128xf32>
    %c4_i32 = arith.constant 4 : i32
    %62 = vector.broadcast %c4_i32 : i32 to vector<8x128xi32>
    %63 = arith.cmpi eq, %27#2, %62 : vector<8x128xi32>
    %c4 = arith.constant 4 : index
    %64 = memref.load %arg1[%c4] : memref<16xf32, #tpu.memory_space<smem>>
    %65 = vector.broadcast %64 : f32 to vector<8x128xf32>
    %66 = arith.select %63, %65, %58 : vector<8x128xi1>, vector<8x128xf32>
    %c4_20 = arith.constant 4 : index
    %67 = memref.load %arg2[%c4_20] : memref<16xf32, #tpu.memory_space<smem>>
    %68 = vector.broadcast %67 : f32 to vector<8x128xf32>
    %69 = arith.select %63, %68, %61 : vector<8x128xi1>, vector<8x128xf32>
    %c5_i32 = arith.constant 5 : i32
    %70 = vector.broadcast %c5_i32 : i32 to vector<8x128xi32>
    %71 = arith.cmpi eq, %27#2, %70 : vector<8x128xi32>
    %c5 = arith.constant 5 : index
    %72 = memref.load %arg1[%c5] : memref<16xf32, #tpu.memory_space<smem>>
    %73 = vector.broadcast %72 : f32 to vector<8x128xf32>
    %74 = arith.select %71, %73, %66 : vector<8x128xi1>, vector<8x128xf32>
    %c5_21 = arith.constant 5 : index
    %75 = memref.load %arg2[%c5_21] : memref<16xf32, #tpu.memory_space<smem>>
    %76 = vector.broadcast %75 : f32 to vector<8x128xf32>
    %77 = arith.select %71, %76, %69 : vector<8x128xi1>, vector<8x128xf32>
    %c6_i32 = arith.constant 6 : i32
    %78 = vector.broadcast %c6_i32 : i32 to vector<8x128xi32>
    %79 = arith.cmpi eq, %27#2, %78 : vector<8x128xi32>
    %c6 = arith.constant 6 : index
    %80 = memref.load %arg1[%c6] : memref<16xf32, #tpu.memory_space<smem>>
    %81 = vector.broadcast %80 : f32 to vector<8x128xf32>
    %82 = arith.select %79, %81, %74 : vector<8x128xi1>, vector<8x128xf32>
    %c6_22 = arith.constant 6 : index
    %83 = memref.load %arg2[%c6_22] : memref<16xf32, #tpu.memory_space<smem>>
    %84 = vector.broadcast %83 : f32 to vector<8x128xf32>
    %85 = arith.select %79, %84, %77 : vector<8x128xi1>, vector<8x128xf32>
    %c7_i32 = arith.constant 7 : i32
    %86 = vector.broadcast %c7_i32 : i32 to vector<8x128xi32>
    %87 = arith.cmpi eq, %27#2, %86 : vector<8x128xi32>
    %c7 = arith.constant 7 : index
    %88 = memref.load %arg1[%c7] : memref<16xf32, #tpu.memory_space<smem>>
    %89 = vector.broadcast %88 : f32 to vector<8x128xf32>
    %90 = arith.select %87, %89, %82 : vector<8x128xi1>, vector<8x128xf32>
    %c7_23 = arith.constant 7 : index
    %91 = memref.load %arg2[%c7_23] : memref<16xf32, #tpu.memory_space<smem>>
    %92 = vector.broadcast %91 : f32 to vector<8x128xf32>
    %93 = arith.select %87, %92, %85 : vector<8x128xi1>, vector<8x128xf32>
    %c8_i32 = arith.constant 8 : i32
    %94 = vector.broadcast %c8_i32 : i32 to vector<8x128xi32>
    %95 = arith.cmpi eq, %27#2, %94 : vector<8x128xi32>
    %c8 = arith.constant 8 : index
    %96 = memref.load %arg1[%c8] : memref<16xf32, #tpu.memory_space<smem>>
    %97 = vector.broadcast %96 : f32 to vector<8x128xf32>
    %98 = arith.select %95, %97, %90 : vector<8x128xi1>, vector<8x128xf32>
    %c8_24 = arith.constant 8 : index
    %99 = memref.load %arg2[%c8_24] : memref<16xf32, #tpu.memory_space<smem>>
    %100 = vector.broadcast %99 : f32 to vector<8x128xf32>
    %101 = arith.select %95, %100, %93 : vector<8x128xi1>, vector<8x128xf32>
    %c9_i32 = arith.constant 9 : i32
    %102 = vector.broadcast %c9_i32 : i32 to vector<8x128xi32>
    %103 = arith.cmpi eq, %27#2, %102 : vector<8x128xi32>
    %c9 = arith.constant 9 : index
    %104 = memref.load %arg1[%c9] : memref<16xf32, #tpu.memory_space<smem>>
    %105 = vector.broadcast %104 : f32 to vector<8x128xf32>
    %106 = arith.select %103, %105, %98 : vector<8x128xi1>, vector<8x128xf32>
    %c9_25 = arith.constant 9 : index
    %107 = memref.load %arg2[%c9_25] : memref<16xf32, #tpu.memory_space<smem>>
    %108 = vector.broadcast %107 : f32 to vector<8x128xf32>
    %109 = arith.select %103, %108, %101 : vector<8x128xi1>, vector<8x128xf32>
    %c10_i32 = arith.constant 10 : i32
    %110 = vector.broadcast %c10_i32 : i32 to vector<8x128xi32>
    %111 = arith.cmpi eq, %27#2, %110 : vector<8x128xi32>
    %c10 = arith.constant 10 : index
    %112 = memref.load %arg1[%c10] : memref<16xf32, #tpu.memory_space<smem>>
    %113 = vector.broadcast %112 : f32 to vector<8x128xf32>
    %114 = arith.select %111, %113, %106 : vector<8x128xi1>, vector<8x128xf32>
    %c10_26 = arith.constant 10 : index
    %115 = memref.load %arg2[%c10_26] : memref<16xf32, #tpu.memory_space<smem>>
    %116 = vector.broadcast %115 : f32 to vector<8x128xf32>
    %117 = arith.select %111, %116, %109 : vector<8x128xi1>, vector<8x128xf32>
    %c11_i32 = arith.constant 11 : i32
    %118 = vector.broadcast %c11_i32 : i32 to vector<8x128xi32>
    %119 = arith.cmpi eq, %27#2, %118 : vector<8x128xi32>
    %c11 = arith.constant 11 : index
    %120 = memref.load %arg1[%c11] : memref<16xf32, #tpu.memory_space<smem>>
    %121 = vector.broadcast %120 : f32 to vector<8x128xf32>
    %122 = arith.select %119, %121, %114 : vector<8x128xi1>, vector<8x128xf32>
    %c11_27 = arith.constant 11 : index
    %123 = memref.load %arg2[%c11_27] : memref<16xf32, #tpu.memory_space<smem>>
    %124 = vector.broadcast %123 : f32 to vector<8x128xf32>
    %125 = arith.select %119, %124, %117 : vector<8x128xi1>, vector<8x128xf32>
    %c12_i32 = arith.constant 12 : i32
    %126 = vector.broadcast %c12_i32 : i32 to vector<8x128xi32>
    %127 = arith.cmpi eq, %27#2, %126 : vector<8x128xi32>
    %c12 = arith.constant 12 : index
    %128 = memref.load %arg1[%c12] : memref<16xf32, #tpu.memory_space<smem>>
    %129 = vector.broadcast %128 : f32 to vector<8x128xf32>
    %130 = arith.select %127, %129, %122 : vector<8x128xi1>, vector<8x128xf32>
    %c12_28 = arith.constant 12 : index
    %131 = memref.load %arg2[%c12_28] : memref<16xf32, #tpu.memory_space<smem>>
    %132 = vector.broadcast %131 : f32 to vector<8x128xf32>
    %133 = arith.select %127, %132, %125 : vector<8x128xi1>, vector<8x128xf32>
    %c13_i32 = arith.constant 13 : i32
    %134 = vector.broadcast %c13_i32 : i32 to vector<8x128xi32>
    %135 = arith.cmpi eq, %27#2, %134 : vector<8x128xi32>
    %c13 = arith.constant 13 : index
    %136 = memref.load %arg1[%c13] : memref<16xf32, #tpu.memory_space<smem>>
    %137 = vector.broadcast %136 : f32 to vector<8x128xf32>
    %138 = arith.select %135, %137, %130 : vector<8x128xi1>, vector<8x128xf32>
    %c13_29 = arith.constant 13 : index
    %139 = memref.load %arg2[%c13_29] : memref<16xf32, #tpu.memory_space<smem>>
    %140 = vector.broadcast %139 : f32 to vector<8x128xf32>
    %141 = arith.select %135, %140, %133 : vector<8x128xi1>, vector<8x128xf32>
    %c14_i32 = arith.constant 14 : i32
    %142 = vector.broadcast %c14_i32 : i32 to vector<8x128xi32>
    %143 = arith.cmpi eq, %27#2, %142 : vector<8x128xi32>
    %c14 = arith.constant 14 : index
    %144 = memref.load %arg1[%c14] : memref<16xf32, #tpu.memory_space<smem>>
    %145 = vector.broadcast %144 : f32 to vector<8x128xf32>
    %146 = arith.select %143, %145, %138 : vector<8x128xi1>, vector<8x128xf32>
    %c14_30 = arith.constant 14 : index
    %147 = memref.load %arg2[%c14_30] : memref<16xf32, #tpu.memory_space<smem>>
    %148 = vector.broadcast %147 : f32 to vector<8x128xf32>
    %149 = arith.select %143, %148, %141 : vector<8x128xi1>, vector<8x128xf32>
    %c15_i32_31 = arith.constant 15 : i32
    %150 = vector.broadcast %c15_i32_31 : i32 to vector<8x128xi32>
    %151 = arith.cmpi eq, %27#2, %150 : vector<8x128xi32>
    %c15 = arith.constant 15 : index
    %152 = memref.load %arg1[%c15] : memref<16xf32, #tpu.memory_space<smem>>
    %153 = vector.broadcast %152 : f32 to vector<8x128xf32>
    %154 = arith.select %151, %153, %146 : vector<8x128xi1>, vector<8x128xf32>
    %c15_32 = arith.constant 15 : index
    %155 = memref.load %arg2[%c15_32] : memref<16xf32, #tpu.memory_space<smem>>
    %156 = vector.broadcast %155 : f32 to vector<8x128xf32>
    %157 = arith.select %151, %156, %149 : vector<8x128xi1>, vector<8x128xf32>
    %158 = math.absf %154 : vector<8x128xf32>
    %cst_33 = arith.constant 9.99999996E-13 : f32
    %159 = vector.broadcast %cst_33 : f32 to vector<8x128xf32>
    %160 = arith.cmpf olt, %158, %159 : vector<8x128xf32>
    %cst_34 = arith.constant 1.000000e+00 : f32
    %161 = vector.broadcast %cst_34 : f32 to vector<8x128xf32>
    %162 = arith.select %160, %161, %154 : vector<8x128xi1>, vector<8x128xf32>
    %163 = arith.mulf %27#1, %154 : vector<8x128xf32>
    %164 = math.exp %163 : vector<8x128xf32>
    %165 = arith.mulf %27#1, %157 : vector<8x128xf32>
    %166 = arith.addf %27#0, %165 : vector<8x128xf32>
    %167 = arith.mulf %164, %27#0 : vector<8x128xf32>
    %168 = arith.divf %157, %162 : vector<8x128xf32>
    %cst_35 = arith.constant 1.000000e+00 : f32
    %169 = vector.broadcast %cst_35 : f32 to vector<8x128xf32>
    %170 = arith.subf %164, %169 : vector<8x128xf32>
    %171 = arith.mulf %168, %170 : vector<8x128xf32>
    %172 = arith.addf %167, %171 : vector<8x128xf32>
    %173 = arith.select %160, %166, %172 : vector<8x128xi1>, vector<8x128xf32>
    %cst_36 = arith.constant 2.000000e+00 : f32
    %174 = vector.broadcast %cst_36 : f32 to vector<8x128xf32>
    %175 = arith.mulf %173, %174 : vector<8x128xf32>
    %cst_37 = arith.constant 1.000000e+00 : f32
    %176 = vector.broadcast %cst_37 : f32 to vector<8x128xf32>
    %177 = arith.subf %175, %176 : vector<8x128xf32>
    %178 = arith.select %9, %0, %177 : vector<8x128xi1>, vector<8x128xf32>
    %c0_38 = arith.constant 0 : index
    %c0_39 = arith.constant 0 : index
    %179 = vector.load %arg5[%c0_38, %c0_39] : memref<8x128xf32, #tpu.memory_space<vmem>>, vector<8x128xf32>
    tpu.vector_store %arg5[%c0_38, %c0_39], %178 {strides = array<i32>} : memref<8x128xf32, #tpu.memory_space<vmem>>, vector<8x128xf32>,
    return
  }
  func.func @transform_0(%arg0: i32) -> i32 {
    %c0_i32 = arith.constant 0 : i32
    %c0_i32_0 = arith.constant 0 : i32
    return %c0_i32 : i32
  }
  func.func @transform_1(%arg0: i32) -> i32 {
    %c0_i32 = arith.constant 0 : i32
    %c0_i32_0 = arith.constant 0 : i32
    return %c0_i32 : i32
  }
  func.func @transform_2(%arg0: i32) -> i32 {
    %c0_i32 = arith.constant 0 : i32
    %c0_i32_0 = arith.constant 0 : i32
    return %c0_i32 : i32
  }
  func.func @transform_3(%arg0: i32) -> (i32, i32) {
    %c0_i32 = arith.constant 0 : i32
    %c0_i32_0 = arith.constant 0 : i32
    return %arg0, %c0_i32 : i32, i32
  }
  func.func @transform_4(%arg0: i32) -> (i32, i32) {
    %c0_i32 = arith.constant 0 : i32
    %c0_i32_0 = arith.constant 0 : i32
    return %arg0, %c0_i32 : i32, i32
  }
}

</mosaic_0001>

<bundles_post_ra>
// kernel: tpu_custom_call.1
= control target key start
LH: loop header
LB: loop body
LE: loop exit
PB: predicated region body
PF: predicated region fallthrough
CT: control target
= control target key end

     0   :  { %10 = vsyncpa [#allocation6], 0  ;;  %s1109_s0 = inlined_call_operand.vmem [shape: f32[16], index: 0, kind: input, shape index: {}]   ;;  %s1110_s1 = inlined_call_operand.vmem [shape: f32[16], index: 1, kind: input, shape index: {}]   ;;  %s1111_s2 = inlined_call_operand.<no memory space> [shape: f32[1], index: 2, kind: input, shape index: {}]   ;;  %s1112_s3 = inlined_call_operand.hbm [shape: f32[8,128], index: 3, kind: input, shape index: {}, may-alias: {3,4}]   ;;  %s1113_s4 = inlined_call_operand.hbm [shape: f32[8,128], index: 4, kind: output, shape index: {}, may-alias: {3,4}]  }
   0x1   :  { %11 = vsyncpa [#allocation8], 0 }
   0x2   :  { %12 = vsyncpa [#allocation4], 0 }
   0x3   :  { %13 = vsyncpa [#allocation5], 0  ;;  %s20_s17 = sshll.u32 %s1109_s0, 4  ;;  %s30_s20 = sshll.u32 %s1110_s1, 4  ;;  %s21_s17 = int_to_ptr.vmem [resolvable:$true] %s20_s17  ;;  %s31_s20 = int_to_ptr.vmem [resolvable:$true] %s30_s20 }
   0x4   :  { %s526_s21 = scalar_lea.vmem %s21_s17, 16  ;;  %p531_p1 = scmp.lt.s32.totalorder %s21_s17, %s21_s17 }
   0x5   :  { %p527_p0 = scmp.ne.s32.totalorder %s21_s17, %s526_s21  ;;  %p532_p2 = scmp.lt.s32.totalorder %s526_s21, %s526_s21 }
   0x7   :  { %p533_p3 = por %p532_p2, %p531_p1 }
   0x9   :  { %p534_p4 = pnand %p533_p3, %p527_p0 }
   0xb   :  { %537 = shalt.err (!%p534_p4)
}
   0xc   :  { %s634_s22 = smov [#allocation3]   ;;  %s538_s23 = scalar_lea.vmem %s31_s20, 16 }
   0xd   :  { %23 = dma.vmem_to_smem %s21_s17, 16, %s634_s22, [#allocation6]  }
   0xe   :  { %p539_p5 = scmp.ne.s32.totalorder %s31_s20, %s538_s23  ;;  %p543_p6 = scmp.lt.s32.totalorder %s31_s20, %s31_s20 }
   0xf   :  { %p544_p7 = scmp.lt.s32.totalorder %s538_s23, %s538_s23 }
  0x11   :  { %p545_p8 = por %p544_p7, %p543_p6 }
  0x13   :  { %p546_p9 = pnand %p545_p8, %p539_p5 }
  0x15   :  { %549 = shalt.err (!%p546_p9)
}
  0x16   :  { %s635_s0 = smov [#allocation7]   ;;  %s636_s1 = smov [#allocation9]  }
  0x17   :  { %33 = dma.vmem_to_smem %s31_s20, 16, %s635_s0, [#allocation8]  }
  0x18   :  { %s42_s24 = sshll.u32 %s636_s1, 4  ;;  %s550_s27 = scalar_lea.hbm %s1112_s3, 128  ;;  %s43_s24 = int_to_ptr.vmem [resolvable:$true] %s42_s24 }
  0x19   :  { %p551_p10 = scmp.ne.s32.totalorder %s1112_s3, %s550_s27  ;;  %p554_p11 = scmp.lt.u32.totalorder %s550_s27, %s1112_s3 }
  0x1b   :  { %p556_p12 = pnand %p554_p11, %p551_p10 }
  0x1d   :  { %559 = shalt.err (!%p556_p12)
}
  0x1e   :  { %s560_s6 = scalar_lea.vmem %s43_s24, 128  ;;  %p565_p0 = scmp.lt.s32.totalorder %s43_s24, %s43_s24 }
  0x1f   :  { %p561_p13 = scmp.ne.s32.totalorder %s43_s24, %s560_s6  ;;  %p566_p1 = scmp.lt.s32.totalorder %s560_s6, %s560_s6 }
  0x21   :  { %p567_p2 = por %p566_p1, %p565_p0 }
  0x23   :  { %p568_p3 = pnand %p567_p2, %p561_p13 }
  0x25   :  { %571 = shalt.err (!%p568_p3)
}
  0x26   :  { %45 = dma.hbm_to_vmem [thread:$0]  %s1112_s3, 128, %s43_s24, [#allocation4]  }
  0x27   :  { %610 = dma.done.wait [#allocation6], 16  }
  0x28   :  { %611 = vsyncadd [#allocation6], 4294967280 }
  0x29   :  { %612 = dma.done.wait [#allocation8], 16  }
  0x2a   :  { %613 = vsyncadd [#allocation8], 4294967280 }
  0x2b   :  { %614 = dma.done.wait [#allocation4], 128  }
  0x2c   :  { %615 = vsyncadd [#allocation4], 4294967168 }
  0x2d   :  { %55 = sfence }
  0x2e   :  { %v682_v0 = vld [vmem:[#allocation9] sm:$0xff]  ;;  %v65_v1 = vstv %s1111_s2   ;;  %s698_s2 = smov 0  }
  0x2f   :  { %v57_v2 = vadd.f32 1.0, %v682_v0 }
  0x31   :  { %v58_v3 = vmul.f32 0.5, %v57_v2 }
  0x33   :  { %vm59_vm0 = vcmp.ge.f32.partialorder %v58_v3, 1.0  ;;  %vm60_vm1 = vcmp.le.f32.partialorder %v58_v3, 0.0  ;;  %v62_v4 = vmax.f32 %v58_v3, 0.0 }
  0x34   :  { %vm688_vm2 = vmor %vm59_vm0, %vm60_vm1 }
  0x35   :  { %v63_v6 = vmin.f32 %v62_v4, 1.0  }
  0x37   :  { %v67_v7 = vmul.f32 16.0, %v63_v6 }
  0x39   :  { %v68_v8 = vfloor.f32 %v67_v7 }
  0x3b   :  { %v69_v9 = vmax.f32 %v68_v8, 0.0 }
  0x3d   :  { %v70_v10 = vmin.f32 %v69_v9, 15.0 }
  0x3f   :  { %v473_v11 = vtrunc.f32 %v70_v10 }
  0x41   :  { %v474_v12 = vcvt.f32.s32 %v473_v11  }
  0x42 LB: > { %s82_s3 = sld [smem:[#allocation3]]  ;;  %vm81_vm3 = vcmp.eq.s32.totalorder %v620_v12, 0  ;;  %vm88_vm4 = vcmp.eq.s32.totalorder %v620_v12, 1  ;;  %s714_s12 = sld [smem:[#allocation3 + $0x1]]  ;;  %vm95_vm5 = vcmp.eq.s32.totalorder %v620_v12, 2  ;;  %vm102_vm6 = vcmp.eq.s32.totalorder %v620_v12, 3  ;;  %s632_s2 = sphi %s698_s2, %s77_s2   ;;  %v628_v6 = vphi %v63_v6, %v1128_v6   ;;  %v624_v1 = vphi %v65_v1, %v1127_v1   ;;  %v620_v12 = vphi %v474_v12, %v1126_v12  }
  0x43   : > { %s85_s11 = sld [smem:[#allocation7]]  ;;  %s716_s13 = sld [smem:[#allocation7 + $0x1]]  ;;  %vm109_vm7 = vcmp.eq.s32.totalorder %v620_v12, 4  ;;  %vm116_vm8 = vcmp.eq.s32.totalorder %v620_v12, 5  ;;  %vm123_vm9 = vcmp.eq.s32.totalorder %v620_v12, 6  ;;  %vm130_vm10 = vcmp.eq.s32.totalorder %v620_v12, 7 }
  0x44   : > { %s719_s14 = sld [smem:[#allocation3 + $0x2]]  ;;  %s724_s16 = sld [smem:[#allocation3 + $0x3]]  ;;  %vm137_vm11 = vcmp.eq.s32.totalorder %v620_v12, 8  ;;  %vm144_vm12 = vcmp.eq.s32.totalorder %v620_v12, 9  ;;  %vm151_vm13 = vcmp.eq.s32.totalorder %v620_v12, 10  ;;  %v193_v16 = vcvt.s32.f32 %v620_v12 }
  0x45   : > { %s721_s15 = sld [smem:[#allocation7 + $0x2]]  ;;  %s726_s17 = sld [smem:[#allocation7 + $0x3]]  ;;  %vm158_vm14 = vcmp.eq.s32.totalorder %v620_v12, 11  ;;  %vm165_vm15 = vcmp.eq.s32.totalorder %v620_v12, 12  ;;  %vm172_vm0 = vcmp.eq.s32.totalorder %v620_v12, 13  ;;  %vm179_vm1 = vcmp.eq.s32.totalorder %v620_v12, 14 }
  0x46   : > { %s730_s18 = sld [smem:[#allocation3 + $0x4]]  ;;  %s736_s20 = sld [smem:[#allocation3 + $0x5]] }
  0x47   : > { %s732_s19 = sld [smem:[#allocation7 + $0x4]]  ;;  %s738_s21 = sld [smem:[#allocation7 + $0x5]] }
  0x48   : > { %v83_v13 = vstv %s82_s3  ;;  %s744_s22 = sld [smem:[#allocation3 + $0x6]]  ;;  %v90_v18 = vstv %s714_s12  ;;  %s754_s0 = sld [smem:[#allocation3 + $0x7]] }
  0x49   : > { %v84_v14 = vsel %vm81_vm3, %v83_v13, 0.0  ;;  %v86_v15 = vstv %s85_s11  ;;  %s746_s23 = sld [smem:[#allocation7 + $0x6]]  ;;  %v93_v19 = vstv %s716_s13  ;;  %s756_s1 = sld [smem:[#allocation7 + $0x7]] }
  0x4a   : > { %v87_v17 = vsel %vm81_vm3, %v86_v15, 0.0  ;;  %v91_v20 = vsel %vm88_vm4, %v90_v18, %v84_v14  ;;  %v97_v22 = vstv %s719_s14  ;;  %s765_s24 = sld [smem:[#allocation3 + $0x8]]  ;;  %v104_v26 = vstv %s724_s16  ;;  %s775_s26 = sld [smem:[#allocation3 + $0x9]] }
  0x4b   : > { %v94_v21 = vsel %vm88_vm4, %v93_v19, %v87_v17  ;;  %v100_v23 = vstv %s721_s15  ;;  %s767_s25 = sld [smem:[#allocation7 + $0x8]]  ;;  %v98_v24 = vsel %vm95_vm5, %v97_v22, %v91_v20  ;;  %v107_v27 = vstv %s726_s17  ;;  %s777_s27 = sld [smem:[#allocation7 + $0x9]] }
  0x4c   : > { %v101_v25 = vsel %vm95_vm5, %v100_v23, %v94_v21  ;;  %v105_v28 = vsel %vm102_vm6, %v104_v26, %v98_v24  ;;  %v111_v30 = vstv %s730_s18  ;;  %s785_s28 = sld [smem:[#allocation3 + $0xa]]  ;;  %v118_v34 = vstv %s736_s20  ;;  %s795_s30 = sld [smem:[#allocation3 + $0xb]] }
  0x4d   : > { %v108_v29 = vsel %vm102_vm6, %v107_v27, %v101_v25  ;;  %v114_v31 = vstv %s732_s19  ;;  %s787_s29 = sld [smem:[#allocation7 + $0xa]]  ;;  %v112_v32 = vsel %vm109_vm7, %v111_v30, %v105_v28  ;;  %v121_v35 = vstv %s738_s21  ;;  %s797_s5 = sld [smem:[#allocation7 + $0xb]] }
  0x4e   : > { %v115_v33 = vsel %vm109_vm7, %v114_v31, %v108_v29  ;;  %v119_v36 = vsel %vm116_vm8, %v118_v34, %v112_v32  ;;  %v125_v38 = vstv %s744_s22  ;;  %s805_s6 = sld [smem:[#allocation3 + $0xc]]  ;;  %v132_v42 = vstv %s754_s0  ;;  %s815_s8 = sld [smem:[#allocation3 + $0xd]] }
  0x4f   : > { %v122_v37 = vsel %vm116_vm8, %v121_v35, %v115_v33  ;;  %v128_v39 = vstv %s746_s23  ;;  %s807_s7 = sld [smem:[#allocation7 + $0xc]]  ;;  %v126_v40 = vsel %vm123_vm9, %v125_v38, %v119_v36  ;;  %v135_v43 = vstv %s756_s1  ;;  %s817_s9 = sld [smem:[#allocation7 + $0xd]] }
  0x50   : > { %v129_v41 = vsel %vm123_vm9, %v128_v39, %v122_v37  ;;  %v133_v44 = vsel %vm130_vm10, %v132_v42, %v126_v40  ;;  %v139_v46 = vstv %s765_s24  ;;  %s825_s10 = sld [smem:[#allocation3 + $0xe]]  ;;  %v146_v50 = vstv %s775_s26  ;;  %s835_s11 = sld [smem:[#allocation3 + $0xf]] }
  0x51   : > { %v136_v45 = vsel %vm130_vm10, %v135_v43, %v129_v41  ;;  %v142_v47 = vstv %s767_s25  ;;  %s827_s3 = sld [smem:[#allocation7 + $0xe]]  ;;  %v140_v48 = vsel %vm137_vm11, %v139_v46, %v133_v44  ;;  %v149_v51 = vstv %s777_s27  ;;  %s439_s12 = sld [smem:[#allocation7 + $0xf]] }
  0x52   : > { %v143_v49 = vsel %vm137_vm11, %v142_v47, %v136_v45  ;;  %v147_v52 = vsel %vm144_vm12, %v146_v50, %v140_v48  ;;  %v153_v54 = vstv %s785_s28  ;;  %v160_v58 = vstv %s795_s30  ;;  %s77_s2 = sadd.s32 1, %s632_s2  }
  0x53   : > { %v150_v53 = vsel %vm144_vm12, %v149_v51, %v143_v49  ;;  %v156_v55 = vstv %s787_s29  ;;  %v154_v56 = vsel %vm151_vm13, %v153_v54, %v147_v52  ;;  %v163_v59 = vstv %s797_s5  ;;  %p74_p4 = scmp.ge.s32.totalorder %s77_s2, 15  }
  0x54   : > { %v157_v57 = vsel %vm151_vm13, %v156_v55, %v150_v53  ;;  %v161_v60 = vsel %vm158_vm14, %v160_v58, %v154_v56  ;;  %v167_v62 = vstv %s805_s6  ;;  %v174_v3 = vstv %s815_s8  ;;  %s249_s13 = sld [smem:[#allocation3]] (%p74_p4)  ;;  %s937_s15 = sld [smem:[#allocation3 + $0x1]] (%p74_p4) }
  0x55   : > { %v164_v61 = vsel %vm158_vm14, %v163_v59, %v157_v57  ;;  %v168_v63 = vsel %vm165_vm15, %v167_v62, %v161_v60  ;;  %v170_v2 = vstv %s807_s7  ;;  %v177_v8 = vstv %s817_s9  ;;  %s252_s14 = sld [smem:[#allocation7]] (%p74_p4)  ;;  %s939_s16 = sld [smem:[#allocation7 + $0x1]] (%p74_p4) }
  0x56   : > { %v171_v4 = vsel %vm165_vm15, %v170_v2, %v164_v61  ;;  %v175_v7 = vsel %vm172_vm0, %v174_v3, %v168_v63  ;;  %v181_v10 = vstv %s825_s10  ;;  %vm186_vm4 = vcmp.eq.s32.totalorder %v620_v12, 15  ;;  %s943_s17 = sld [smem:[#allocation3 + $0x2]] (%p74_p4)  ;;  %s948_s2 = sld [smem:[#allocation3 + $0x3]] (%p74_p4) }
  0x57   : > { %v178_v9 = vsel %vm172_vm0, %v177_v8, %v171_v4  ;;  %v184_v11 = vstv %s827_s3  ;;  %v182_v13 = vsel %vm179_vm1, %v181_v10, %v175_v7  ;;  %v188_v15 = vstv %s835_s11  ;;  %s945_s18 = sld [smem:[#allocation7 + $0x2]] (%p74_p4)  ;;  %s950_s19 = sld [smem:[#allocation7 + $0x3]] (%p74_p4) }
  0x58   : > { %v185_v14 = vsel %vm179_vm1, %v184_v11, %v178_v9  ;;  %v191_v17 = vstv %s439_s12  ;;  %v189_v18 = vsel %vm186_vm4, %v188_v15, %v182_v13  ;;  %v195_v23 = vadd.f32 1.0, %v193_v16  ;;  %s953_s20 = sld [smem:[#allocation3 + $0x4]] (%p74_p4)  ;;  %s959_s22 = sld [smem:[#allocation3 + $0x5]] (%p74_p4) }
  0x59   : > { %v192_v19 = vsel %vm186_vm4, %v191_v17, %v185_v14  ;;  %v197_v20 = vmul.f32 %v628_v6, %v189_v18  ;;  %v199_v21 = vand.u32 2147483647, %v189_v18  ;;  %v202_v22 = vmul.f32 %v624_v1, %v189_v18  ;;  %s955_s21 = sld [smem:[#allocation7 + $0x4]] (%p74_p4)  ;;  %s961_s23 = sld [smem:[#allocation7 + $0x5]] (%p74_p4) }
  0x5a   : > { %v194_v28 = vmul.f32 0.0625, %v193_v16  ;;  %v196_v29 = vmul.f32 0.0625, %v195_v23  ;;  %v224_v33 = vand.u32 2147483647, %v192_v19  ;;  %v205_v36 = vmul.f32 %v624_v1, %v192_v19  ;;  %s965_s0 = sld [smem:[#allocation3 + $0x6]] (%p74_p4)  ;;  %s977_s24 = sld [smem:[#allocation3 + $0x7]] (%p74_p4) }
  0x5b   : > { %v198_v24 = vadd.f32 %v197_v20, %v192_v19  ;;  %vm872_vm5 = vcmp.lt.f32.partialorder %v199_v21, 1e-12  ;;  %v203_v26 = vmul.f32 1.442695, %v202_v22  ;;  %v637_v48 = vmov 4294967295   ;;  %s967_s1 = sld [smem:[#allocation7 + $0x6]] (%p74_p4) }
  0x5c   : > { %v201_v27 = vsel %vm872_vm5, 1.0, %v189_v18  ;;  %vm882_vm8 = vcmp.lt.f32.partialorder %v224_v33, 1e-12  ;;  %v206_v42 = vadd.f32 %v628_v6, %v205_v36  ;;  %v257_v7 = vstv (%p74_p4), %s937_s15  ;;  %s979_s25 = sld [smem:[#allocation7 + $0x7]] (%p74_p4)  ;;  %s988_s26 = sld [smem:[#allocation3 + $0x8]] (%p74_p4) }
  0x5d   : > { %512 = vpow2.f32 %v203_v26  ;;  %v227_v30 = vand.u32 2147483647, %v198_v24  ;;  %vm217_vm6 = vcmp.ge.f32.partialorder %v198_v24, 0.0  ;;  %vm219_vm9 = vcmp.le.f32.partialorder %v198_v24, 0.0  ;;  %s990_s27 = sld [smem:[#allocation7 + $0x8]] (%p74_p4)  ;;  %s998_s28 = sld [smem:[#allocation3 + $0x9]] (%p74_p4) }
  0x5e   : > { %514 = vrcp.f32 %v201_v27  ;;  %v223_v32 = vsel %vm217_vm6, %v196_v29, %v194_v28  ;;  %vm891_vm10 = vmand %vm217_vm6, %vm186_vm4  ;;  %v226_v47 = vsel %vm882_vm8, 1.0, %v192_v19  ;;  %v245_v49 = vsel %vm217_vm6, 1, %v637_v48  ;;  %s1000_s29 = sld [smem:[#allocation7 + $0x9]] (%p74_p4)  ;;  %s1008_s30 = sld [smem:[#allocation3 + $0xa]] (%p74_p4) }
  0x5f   : > { %vm228_vm7 = vcmp.lt.f32.partialorder %v227_v30, 1e-12  ;;  %v230_v34 = vmul.f32 %v223_v32, %v189_v18  ;;  %vm897_vm11 = vmand %vm219_vm9, %vm81_vm3  ;;  %v246_v54 = vadd.s32 %v620_v12, %v245_v49  ;;  %v234_v57 = vsub.f32 %v223_v32, %v628_v6  ;;  %s1010_s5 = sld [smem:[#allocation7 + $0xa]] (%p74_p4)  ;;  %s1018_s6 = sld [smem:[#allocation3 + $0xb]] (%p74_p4) }
  0x60   : > { %v229_v31 = vsel %vm228_vm7, 1.0, %v198_v24  ;;  %vm221_vm12 = vmor %vm891_vm10, %vm897_vm11  ;;  %v260_v8 = vstv (%p74_p4), %s939_s16  ;;  %v264_v11 = vstv (%p74_p4), %s943_s17  ;;  %v267_v13 = vstv (%p74_p4), %s945_s18  ;;  %s463_s7 = sld [smem:[#allocation3 + $0xc]] (%p74_p4)  ;;  %s1032_s8 = sld [smem:[#allocation7 + $0xb]] (%p74_p4) }
  0x61   : > { %516 = vrcp.f32 %v229_v31  ;;  %v231_v41 = vadd.f32 %v230_v34, %v192_v19  ;;  %v271_v17 = vstv (%p74_p4), %s948_s2  ;;  %v274_v18 = vstv (%p74_p4), %s950_s19  ;;  %s465_s9 = sld [smem:[#allocation3 + $0xd]] (%p74_p4)  ;;  %s467_s10 = sld [smem:[#allocation3 + $0xe]] (%p74_p4) }
  0x62   : > { %518 = vrcp.f32 %v226_v47  ;;  %v278_v21 = vstv (%p74_p4), %s953_s20  ;;  %v281_v22 = vstv (%p74_p4), %s955_s21  ;;  %v285_v25 = vstv (%p74_p4), %s959_s22  ;;  %s469_s3 = sld [smem:[#allocation3 + $0xf]] (%p74_p4)  ;;  %s464_s11 = sld [smem:[#allocation7 + $0xc]] (%p74_p4) }
  0x63   :  { %v288_v26 = vstv (%p74_p4), %s961_s23  ;;  %v295_v30 = vstv (%p74_p4), %s967_s1  ;;  %v299_v33 = vstv (%p74_p4), %s977_s24  ;;  %v302_v34 = vstv (%p74_p4), %s979_s25  ;;  %s466_s12 = sld [smem:[#allocation7 + $0xd]] (%p74_p4)  ;;  %s638_s15 = smov (%p74_p4), [#allocation10]  }
  0x64   :  { %s385_s16 = sshll.u32 (%p74_p4), %s638_s15, 4  ;;  %s386_s16 = int_to_ptr.vmem [resolvable:$true] %s385_s16 }
  0x65   :  { %v323_v46 = vstv (%p74_p4), %s1010_s5  ;;  %v327_v47 = vstv (%p74_p4), %s1018_s6  ;;  %s572_s17 = scalar_lea.vmem (%p74_p4), %s386_s16, 128  ;;  %p577_p6 = scmp.lt.s32.totalorder (%p74_p4), %s386_s16, %s386_s16 }
  0x66   :  { %v334_v49 = vstv (%p74_p4), %s463_s7  ;;  %p573_p5 = scmp.ne.s32.totalorder (%p74_p4), %s386_s16, %s572_s17  ;;  %p578_p7 = scmp.lt.s32.totalorder (%p74_p4), %s572_s17, %s572_s17 }
  0x67   : > { %v513_v35 = vpop.eup %512 }
  0x68   : > { %v515_v37 = vpop.eup %514  ;;  %v440_v38 = vadd.f32 -1.0, %v513_v35  ;;  %v207_v16 = vmul.f32 %v628_v6, %v513_v35  ;;  %p579_p8 = por (%p74_p4), %p578_p7, %p577_p6 }
  0x69   : > { %v209_v40 = vmul.f32 %v515_v37, %v192_v19 }
  0x6a   :  { %p580_p9 = pnand (%p74_p4), %p579_p8, %p573_p5 }
  0x6b   : > { %v211_v43 = vmul.f32 %v440_v38, %v209_v40  ;;  %v517_v45 = vpop.eup %516  ;;  %v309_v38 = vstv (%p74_p4), %s990_s27  ;;  %v313_v40 = vstv (%p74_p4), %s998_s28 }
  0x6c   : > { %v233_v51 = vmul.f32 %v517_v45, %v231_v41  ;;  %v519_v58 = vpop.eup %518  ;;  %v316_v41 = vstv (%p74_p4), %s1000_s29 }
  0x6d   : > { %v212_v50 = vadd.f32 %v211_v43, %v207_v16  ;;  %v236_v60 = vmul.f32 %v519_v58, %v234_v57  ;;  %v320_v43 = vstv (%p74_p4), %s1008_s30  ;;  %v330_v57 = vstv (%p74_p4), %s1032_s8 }
  0x6e   : > { %v237_v53 = vmax.f32 %v233_v51, 1e-12  ;;  %v341_v51 = vstv (%p74_p4), %s465_s9 }
  0x6f   : > { %v213_v52 = vsel %vm872_vm5, %v206_v42, %v212_v50 }
  0x70   : > { %vm214_vm3 = vcmp.le.f32.partialorder %v194_v28, %v213_v52  ;;  %vm215_vm13 = vcmp.le.f32.partialorder %v213_v52, %v196_v29  ;;  %520 = vlog2.f32 %v237_v53  ;;  %v292_v29 = vstv (%p74_p4), %s965_s0 }
  0x71   : > { %vm216_vm14 = vmand %vm214_vm3, %vm215_vm13 }
  0x72   : > { %vm222_vm15 = vmor %vm216_vm14, %vm221_vm12 }
  0x73   : > { %v912_v55 = vsel %vm222_vm15, %v628_v6, %v223_v32   ;;  %v915_v12 = vsel %vm222_vm15, %v620_v12, %v246_v54   ;;  %v348_v54 = vstv (%p74_p4), %s467_s10 }
  0x74   : > { %v1124_v56 = vmov %v915_v12  ;;  %v1128_v6 = vmov %v912_v55 }
  0x75   : > { %v1126_v12 = vmov %v1124_v56  ;;  %vm248_vm0 = vcmp.eq.s32.totalorder (%p74_p4), %v1124_v56, 0  ;;  %vm255_vm1 = vcmp.eq.s32.totalorder (%p74_p4), %v1124_v56, 1  ;;  %vm262_vm4 = vcmp.eq.s32.totalorder (%p74_p4), %v1124_v56, 2 }
  0x76   :  { %vm276_vm6 = vcmp.eq.s32.totalorder (%p74_p4), %v1124_v56, 4  ;;  %vm283_vm7 = vcmp.eq.s32.totalorder (%p74_p4), %v1124_v56, 5  ;;  %vm290_vm8 = vcmp.eq.s32.totalorder (%p74_p4), %v1124_v56, 6  ;;  %vm297_vm9 = vcmp.eq.s32.totalorder (%p74_p4), %v1124_v56, 7 }
  0x77   :  { %vm304_vm10 = vcmp.eq.s32.totalorder (%p74_p4), %v1124_v56, 8  ;;  %v253_v6 = vstv (%p74_p4), %s252_s14  ;;  %vm311_vm11 = vcmp.eq.s32.totalorder (%p74_p4), %v1124_v56, 9  ;;  %vm318_vm12 = vcmp.eq.s32.totalorder (%p74_p4), %v1124_v56, 10  ;;  %s470_s14 = sld [smem:[#allocation7 + $0xf]] (%p74_p4) }
  0x78   :  { %v254_v4 = vsel (%p74_p4), %vm248_vm0, %v253_v6, 0.0  ;;  %vm325_vm3 = vcmp.eq.s32.totalorder (%p74_p4), %v1124_v56, 11  ;;  %vm332_vm13 = vcmp.eq.s32.totalorder (%p74_p4), %v1124_v56, 12  ;;  %vm339_vm14 = vcmp.eq.s32.totalorder (%p74_p4), %v1124_v56, 13 }
  0x79   :  { %v261_v10 = vsel (%p74_p4), %vm255_vm1, %v260_v8, %v254_v4 }
  0x7a   : > { %v521_v59 = vpop.eup %520  ;;  %v268_v15 = vsel (%p74_p4), %vm262_vm4, %v267_v13, %v261_v10 }
  0x7b   : > { %v239_v61 = vmul.f32 0.6931472, %v521_v59  ;;  %v355_v59 = vstv (%p74_p4), %s469_s3 }
  0x7d   : > { %v240_v62 = vmul.f32 %v515_v37, %v239_v61  ;;  %v306_v37 = vstv (%p74_p4), %s988_s26 }
  0x7e   :  { %76 = sbr.rel (!%p74_p4) target bundleno = 66 (0x42), region = 55 }
  0x7f   : > { %v241_v63 = vsel %vm872_vm5, %v236_v60, %v240_v62  ;;  %vm269_vm5 = vcmp.eq.s32.totalorder (%p74_p4), %v1124_v56, 3 }
  0x80   : > { %v243_v2 = vsub.f32 %v624_v1, %v241_v63  ;;  %v275_v20 = vsel (%p74_p4), %vm269_vm5, %v274_v18, %v268_v15 }
  0x81   :  { %v282_v24 = vsel (%p74_p4), %vm276_vm6, %v281_v22, %v275_v20 }
  0x82   : > { %v922_v1 = vsel %vm222_vm15, %v624_v1, %v243_v2   ;;  %v289_v28 = vsel (%p74_p4), %vm283_vm7, %v288_v26, %v282_v24  ;;  %vm346_vm15 = vcmp.eq.s32.totalorder (%p74_p4), %v1124_v56, 14  ;;  %v337_v2 = vstv (%p74_p4), %s464_s11 }
  0x83   : > { %v1125_v3 = vmov %v922_v1  ;;  %v296_v32 = vsel (%p74_p4), %vm290_vm8, %v295_v30, %v289_v28 }
  0x84   : > { %v1127_v1 = vmov %v1125_v3  ;;  %v303_v36 = vsel (%p74_p4), %vm297_vm9, %v302_v34, %v296_v32 }
  0x85   :  { %v250_v1 = vstv %s249_s13  ;;  %v310_v16 = vsel %vm304_vm10, %v309_v38, %v303_v36  ;;  %s468_s13 = sld [smem:[#allocation7 + $0xe]] }
  0x86   :  { %v251_v12 = vsel %vm248_vm0, %v250_v1, 0.0  ;;  %v317_v44 = vsel %vm311_vm11, %v316_v41, %v310_v16  ;;  %vm353_vm0 = vcmp.eq.s32.totalorder %v1124_v56, 15 }
  0x87   :  { %v258_v9 = vsel %vm255_vm1, %v257_v7, %v251_v12  ;;  %v324_v52 = vsel %vm318_vm12, %v323_v46, %v317_v44  ;;  %v344_v7 = vstv %s466_s12 }
  0x88   :  { %v265_v14 = vsel %vm262_vm4, %v264_v11, %v258_v9  ;;  %v331_v63 = vsel %vm325_vm3, %v330_v57, %v324_v52  ;;  %v358_v11 = vstv %s470_s14 }
  0x89   :  { %v272_v19 = vsel %vm269_vm5, %v271_v17, %v265_v14  ;;  %v338_v4 = vsel %vm332_vm13, %v337_v2, %v331_v63 }
  0x8a   :  { %v279_v23 = vsel %vm276_vm6, %v278_v21, %v272_v19  ;;  %v345_v8 = vsel %vm339_vm14, %v344_v7, %v338_v4 }
  0x8b   :  { %v286_v27 = vsel %vm283_vm7, %v285_v25, %v279_v23  ;;  %v351_v9 = vstv %s468_s13 }
  0x8c   :  { %v293_v31 = vsel %vm290_vm8, %v292_v29, %v286_v27  ;;  %v352_v10 = vsel %vm346_vm15, %v351_v9, %v345_v8 }
  0x8d   :  { %v300_v35 = vsel %vm297_vm9, %v299_v33, %v293_v31  ;;  %v359_v13 = vsel %vm353_vm0, %v358_v11, %v352_v10 }
  0x8e   :  { %v307_v39 = vsel %vm304_vm10, %v306_v37, %v300_v35  ;;  %v366_v15 = vmul.f32 %v359_v13, %v1125_v3 }
  0x8f   :  { %v314_v42 = vsel %vm311_vm11, %v313_v40, %v307_v39 }
  0x90   :  { %v321_v45 = vsel %vm318_vm12, %v320_v43, %v314_v42  ;;  %v367_v21 = vadd.f32 %v366_v15, %v912_v55 }
  0x91   :  { %v328_v48 = vsel %vm325_vm3, %v327_v47, %v321_v45 }
  0x92   :  { %v335_v50 = vsel %vm332_vm13, %v334_v49, %v328_v48 }
  0x93   :  { %v342_v53 = vsel %vm339_vm14, %v341_v51, %v335_v50 }
  0x94   :  { %v349_v58 = vsel %vm346_vm15, %v348_v54, %v342_v53 }
  0x95   :  { %v356_v60 = vsel %vm353_vm0, %v355_v59, %v349_v58 }
  0x96   :  { %v360_v61 = vand.u32 2147483647, %v356_v60  ;;  %v363_v62 = vmul.f32 %v356_v60, %v1125_v3 }
  0x98   :  { %vm1075_vm1 = vcmp.lt.f32.partialorder %v360_v61, 1e-12  ;;  %v364_v6 = vmul.f32 1.442695, %v363_v62 }
  0x99   :  { %v362_v12 = vsel %vm1075_vm1, 1.0, %v356_v60 }
  0x9a   :  { %522 = vpow2.f32 %v364_v6 }
  0x9b   :  { %524 = vrcp.f32 %v362_v12 }
  0xa4   :  { %v523_v14 = vpop.eup %522 }
  0xa5   :  { %v525_v17 = vpop.eup %524  ;;  %v471_v18 = vadd.f32 -1.0, %v523_v14  ;;  %v368_v19 = vmul.f32 %v523_v14, %v912_v55 }
  0xa6   :  { %v370_v20 = vmul.f32 %v525_v17, %v359_v13 }
  0xa8   :  { %v372_v22 = vmul.f32 %v471_v18, %v370_v20 }
  0xaa   :  { %v373_v23 = vadd.f32 %v372_v22, %v368_v19 }
  0xac   :  { %v374_v24 = vsel %vm1075_vm1, %v367_v21, %v373_v23 }
  0xad   :  { %v375_v25 = vmul.f32 2.0, %v374_v24 }
  0xaf   :  { %v472_v56 = vadd.f32 -1.0, %v375_v25 }
  0xb1   :  { %v377_v3 = vsel %vm688_vm2, %v682_v0, %v472_v56 }
  0xb2   :  { %378 = vst [vmem:[#allocation10] sm:$0xff] %v377_v3 }
  0xb3   :  { %583 = shalt.err (!%p580_p9)
}
  0xb4   :  { %s584_s19 = scalar_lea.hbm %s1113_s4, 128 }
  0xb5   :  { %p585_p10 = scmp.ne.s32.totalorder %s1113_s4, %s584_s19  ;;  %p588_p11 = scmp.lt.u32.totalorder %s584_s19, %s1113_s4 }
  0xb7   :  { %p590_p12 = pnand %p588_p11, %p585_p10 }
  0xb9   :  { %593 = shalt.err (!%p590_p12)
}
  0xba   :  { %388 = dma.vmem_to_hbm [thread:$0]  %s386_s16, 128, %s1113_s4, [#allocation5]  }
  0xbb   :  { %616 = dma.done.wait [#allocation5], 128  }
  0xbc   :  { %617 = vsyncadd [#allocation5], 4294967168 }
  0xbd   :  { %392 = vsyncpa [#allocation4], 1 }
  0xbe   :  { %393 = vsyncpa [#allocation5], 1 }
  0xbf   :  { %394 = vsyncpa [#allocation6], 1 }
  0xc0   :  { %395 = vsyncpa [#allocation8], 1 }

</bundles_post_ra>
